<compile_context>
chip_gen: v7x
topology: tpu7x:2x2x1
jax: 0.10.0
libtpu: 0.0.40
codegen_flags: <defaults>
</compile_context>

<pallas_src>
import jax
import jax.numpy as jnp
import numpy as np
from jax import lax
from jax.experimental import pallas as pl
from jax.experimental.pallas import tpu as pltpu

_LANES = 128
_SUBLANES = 8


def _make_dice_kernel(w0: float, w1: float, smooth: float,
                      rows: int, tile_rows: int, inner_rows: int,
                      need_mask: bool):
    same_w = (w0 == w1)
    dw = w1 - w0
    n_inner = tile_rows // inner_rows
    groups = inner_rows // _SUBLANES

    def kernel(p_ref, t_ref, out_ref, it_acc, pp_acc, tt_acc):
        k = pl.program_id(1)
        last = pl.num_programs(1) - 1

        @pl.when(k == 0)
        def _init():
            it_acc[...] = jnp.zeros_like(it_acc)
            pp_acc[...] = jnp.zeros_like(pp_acc)
            tt_acc[...] = jnp.zeros_like(tt_acc)

        def _reduce8(x):
            # (inner_rows, 128) -> (8, 128): leading-axis sum = vreg-wise VPU
            # adds, no XLU, no big intermediates.
            return jnp.sum(x.reshape(groups, _SUBLANES, _LANES), axis=0)

        def _step(r0, masked):
            p = p_ref[pl.ds(r0, inner_rows), :].astype(jnp.float32)
            t = t_ref[pl.ds(r0, inner_rows), :].astype(jnp.float32)
            if masked:
                # Last block may overrun the array; zero the undefined tail.
                row_ids = (k * tile_rows + r0
                           + lax.broadcasted_iota(jnp.int32,
                                                  (inner_rows, _LANES), 0))
                valid = row_ids < rows
                p = jnp.where(valid, p, 0.0)
                t = jnp.where(valid, t, 0.0)
            if same_w:
                # Constant weight folds into one w0^2 factor at finalize.
                it, pp, tt = p * t, p * p, t * t
            else:
                w = t * dw + w0
                w2 = w * w
                it, pp, tt = w2 * (p * t), w2 * (p * p), w2 * (t * t)
            it_acc[...] += _reduce8(it)
            pp_acc[...] += _reduce8(pp)
            tt_acc[...] += _reduce8(tt)

        def _accumulate_block(masked):
            if n_inner == 1:
                _step(0, masked)
            else:
                def body(i, carry):
                    _step(pl.multiple_of(i * inner_rows, inner_rows), masked)
                    return carry
                lax.fori_loop(0, n_inner, body, 0, unroll=(n_inner <= 8))

        if need_mask:
            # Only the last (partial) block pays for the masking ops.
            @pl.when(k == last)
            def _masked():
                _accumulate_block(True)

            @pl.when(k != last)
            def _full():
                _accumulate_block(False)
        else:
            _accumulate_block(False)

        @pl.when(k == last)
        def _finalize():
            inter = jnp.sum(it_acc[...])
            union = jnp.sum(pp_acc[...]) + jnp.sum(tt_acc[...])
            if same_w:
                w2c = w0 * w0
                inter = inter * w2c
                union = union * w2c
            dice = 1.0 - (2.0 * inter + smooth) / (union + smooth)
            out_ref[...] = jnp.full((1, _LANES), dice, dtype=jnp.float32)

    return kernel


def weighted_dice_loss(logit, truth, weights=(0.5, 0.5), smooth=1e-5,
                       max_tile_rows=4096):
    """Pallas implementation of WeightedDiceLoss.forward. Returns a scalar."""
    assert logit.shape == truth.shape
    B = logit.shape[0]

    # Keep native dtypes; only bool needs widening so the kernel can load it.
    if logit.dtype == jnp.bool_:
        logit = logit.astype(jnp.int8)
    if truth.dtype == jnp.bool_:
        truth = truth.astype(jnp.int8)

    p = logit.reshape(B, -1)   # contiguous row-major reshape: free, no copy
    t = truth.reshape(B, -1)
    N = p.shape[1]

    # Pad the flat length up to a multiple of 8*128 so every batch row folds
    # into full (8,128) vregs.  Zero padding is exact for all three sums
    # (w = w0 on padded zeros, every term is 0).
    pad = (-N) % (_SUBLANES * _LANES)
    if pad:
        # TODO(synk): mask the 2-D tail in-kernel instead of this HBM copy.
        p = jnp.pad(p, ((0, 0), (0, pad)))
        t = jnp.pad(t, ((0, 0), (0, pad)))
    rows = (N + pad) // _LANES            # multiple of 8

    # Sublane-dense layout: each batch row becomes (rows, 128) full tiles.
    p = p.reshape(B, rows, _LANES)
    t = t.reshape(B, rows, _LANES)

    if rows <= max_tile_rows:
        tile_rows = rows                  # full extent -> always a legal block
        need_mask = False
    else:
        # Multiple of 32 keeps the block legal for f32/bf16/int8 packed tiling.
        tile_rows = max(32, (max_tile_rows // 32) * 32)
        need_mask = (rows % tile_rows) != 0
    num_chunks = pl.cdiv(rows, tile_rows)

    # Register-friendly inner chunk: largest divisor of tile_rows that is a
    # multiple of 8 and <= 64 rows (<= 8 f32 vregs per operand).
    m = tile_rows // _SUBLANES
    d = max(x for x in range(1, 9) if m % x == 0)
    inner_rows = _SUBLANES * d

    kernel = _make_dice_kernel(float(weights[0]), float(weights[1]),
                               float(smooth), rows, tile_rows, inner_rows,
                               need_mask)

    bytes_accessed = (int(p.size) * p.dtype.itemsize
                      + int(t.size) * t.dtype.itemsize
                      + B * _LANES * 4)
    cost = pl.CostEstimate(flops=12 * B * rows * _LANES, transcendentals=0,
                           bytes_accessed=bytes_accessed)

    out = pl.pallas_call(
        kernel,
        out_shape=jax.ShapeDtypeStruct((B, 1, _LANES), jnp.float32),
        grid_spec=pltpu.PrefetchScalarGridSpec(
            num_scalar_prefetch=0,
            grid=(B, num_chunks),
            in_specs=[
                pl.BlockSpec((None, tile_rows, _LANES), lambda b, k: (b, k, 0)),
                pl.BlockSpec((None, tile_rows, _LANES), lambda b, k: (b, k, 0)),
            ],
            out_specs=pl.BlockSpec((None, 1, _LANES), lambda b, k: (b, 0, 0)),
            scratch_shapes=[
                pltpu.VMEM((_SUBLANES, _LANES), jnp.float32),  # sum(w^2 p t)
                pltpu.VMEM((_SUBLANES, _LANES), jnp.float32),  # sum(w^2 p p)
                pltpu.VMEM((_SUBLANES, _LANES), jnp.float32),  # sum(w^2 t t)
            ],
        ),
        compiler_params=pltpu.CompilerParams(
            dimension_semantics=("parallel", "arbitrary"),
            vmem_limit_bytes=32 * 1024 * 1024,
        ),
        cost_estimate=cost,
    )(p, t)

    # Per-batch dice is broadcast across the 128 output lanes; take lane 0.
    return jnp.mean(out[:, 0, 0])


def weighted_dice_loss_ref(logit, truth, weights=(0.5, 0.5), smooth=1e-5):
    """Pure JAX reference (mirrors the PyTorch forward exactly)."""
    B = logit.shape[0]
    p = logit.reshape(B, -1).astype(jnp.float32)
    t = truth.reshape(B, -1).astype(jnp.float32)
    w = t * (weights[1] - weights[0]) + weights[0]
    pw = w * p
    tw = w * t
    inter = jnp.sum(pw * tw, axis=-1)
    union = jnp.sum(pw * pw, axis=-1) + jnp.sum(tw * tw, axis=-1)
    dice = 1.0 - (2.0 * inter + smooth) / (union + smooth)
    return jnp.mean(dice)


if __name__ == "__main__":
    key = jax.random.PRNGKey(0)
    k1, k2, k3, k4 = jax.random.split(key, 4)

    # Case 1: small NCHW f32 inputs (B=2, C=4, 16x16), default equal weights.
    B, C, H, W = 2, 4, 16, 16
    logit = jax.nn.sigmoid(jax.random.normal(k1, (B, C, H, W), dtype=jnp.float32))
    truth = (jax.random.uniform(k2, (B, C, H, W)) > 0.5).astype(jnp.float32)

    out = jax.block_until_ready(weighted_dice_loss(logit, truth))
    ref = jax.block_until_ready(weighted_dice_loss_ref(logit, truth))
    np.testing.assert_allclose(np.asarray(out), np.asarray(ref),
                               rtol=1e-5, atol=1e-6)

    # Case 2: unequal weights (general in-kernel weighting path).
    out = jax.block_until_ready(
        weighted_dice_loss(logit, truth, weights=(0.3, 0.7)))
    ref = jax.block_until_ready(
        weighted_dice_loss_ref(logit, truth, weights=(0.3, 0.7)))
    np.testing.assert_allclose(np.asarray(out), np.asarray(ref),
                               rtol=1e-5, atol=1e-6)

    # Case 3: bf16 logits (native-dtype path) + multi-chunk grid with a masked
    # partial last block (rows=40, tile_rows=32 -> 2 chunks, last one masked).
    B2, C2, H2, W2 = 2, 5, 32, 32
    logit2 = jax.nn.sigmoid(
        jax.random.normal(k3, (B2, C2, H2, W2))).astype(jnp.bfloat16)
    truth2 = (jax.random.uniform(k4, (B2, C2, H2, W2)) > 0.5).astype(jnp.float32)
    out = jax.block_until_ready(
        weighted_dice_loss(logit2, truth2, max_tile_rows=32))
    ref = jax.block_until_ready(weighted_dice_loss_ref(logit2, truth2))
    np.testing.assert_allclose(np.asarray(out), np.asarray(ref),
                               rtol=1e-4, atol=1e-5)

    print("KERNEL_OK")
</pallas_src>

<mosaic_0001>
module attributes {stable_mosaic.version = 11 : i64} {
  func.func @kernel(%arg0: i32, %arg1: i32, %arg2: memref<1x8x128xf32, #tpu.memory_space<vmem>>, %arg3: memref<1x8x128xf32, #tpu.memory_space<vmem>>, %arg4: memref<1x1x128xf32, #tpu.memory_space<vmem>>, %arg5: memref<8x128xf32, #tpu.memory_space<vmem>>, %arg6: memref<8x128xf32, #tpu.memory_space<vmem>>, %arg7: memref<8x128xf32, #tpu.memory_space<vmem>>) attributes {dimension_semantics = [#tpu.dimension_semantics<parallel>, #tpu.dimension_semantics<arbitrary>], iteration_bounds = array<i64: 2, 1>, scalar_prefetch = 0 : i64, scratch_operands = 3 : i64, tpu.core_type = #tpu.core_type<tc>, window_params = [{transform_indices = @transform_0, window_bounds = array<i64: 1, 8, 128>}, {transform_indices = @transform_1, window_bounds = array<i64: 1, 8, 128>}, {transform_indices = @transform_2, window_bounds = array<i64: 1, 1, 128>}]} {
    %c0_i32 = arith.constant 0 : i32
    %0 = arith.cmpi eq, %arg1, %c0_i32 : i32
    %1 = arith.extui %0 : i1 to i32
    %c0_i32_0 = arith.constant 0 : i32
    %2 = arith.cmpi ne, %1, %c0_i32_0 : i32
    scf.if %2 {
      %cst_22 = arith.constant 0.000000e+00 : f32
      %28 = vector.broadcast %cst_22 : f32 to vector<8x128xf32>
      %c0_23 = arith.constant 0 : index
      %c0_24 = arith.constant 0 : index
      %29 = vector.load %arg5[%c0_23, %c0_24] : memref<8x128xf32, #tpu.memory_space<vmem>>, vector<8x128xf32>
      tpu.vector_store %arg5[%c0_23, %c0_24], %28 {strides = array<i32>} : memref<8x128xf32, #tpu.memory_space<vmem>>, vector<8x128xf32>,
      %cst_25 = arith.constant 0.000000e+00 : f32
      %30 = vector.broadcast %cst_25 : f32 to vector<8x128xf32>
      %c0_26 = arith.constant 0 : index
      %c0_27 = arith.constant 0 : index
      %31 = vector.load %arg6[%c0_26, %c0_27] : memref<8x128xf32, #tpu.memory_space<vmem>>, vector<8x128xf32>
      tpu.vector_store %arg6[%c0_26, %c0_27], %30 {strides = array<i32>} : memref<8x128xf32, #tpu.memory_space<vmem>>, vector<8x128xf32>,
      %cst_28 = arith.constant 0.000000e+00 : f32
      %32 = vector.broadcast %cst_28 : f32 to vector<8x128xf32>
      %c0_29 = arith.constant 0 : index
      %c0_30 = arith.constant 0 : index
      %33 = vector.load %arg7[%c0_29, %c0_30] : memref<8x128xf32, #tpu.memory_space<vmem>>, vector<8x128xf32>
      tpu.vector_store %arg7[%c0_29, %c0_30], %32 {strides = array<i32>} : memref<8x128xf32, #tpu.memory_space<vmem>>, vector<8x128xf32>,
    } else {
    }
    %c0 = arith.constant 0 : index
    %c0_1 = arith.constant 0 : index
    %c0_2 = arith.constant 0 : index
    %3 = vector.load %arg2[%c0, %c0_1, %c0_2] : memref<1x8x128xf32, #tpu.memory_space<vmem>>, vector<1x8x128xf32>
    %4 = vector.shape_cast %3 : vector<1x8x128xf32> to vector<8x128xf32>
    %c0_3 = arith.constant 0 : index
    %c0_4 = arith.constant 0 : index
    %c0_5 = arith.constant 0 : index
    %5 = vector.load %arg3[%c0_3, %c0_4, %c0_5] : memref<1x8x128xf32, #tpu.memory_space<vmem>>, vector<1x8x128xf32>
    %6 = vector.shape_cast %5 : vector<1x8x128xf32> to vector<8x128xf32>
    %7 = arith.mulf %4, %6 : vector<8x128xf32>
    %8 = arith.mulf %4, %4 : vector<8x128xf32>
    %9 = arith.mulf %6, %6 : vector<8x128xf32>
    %c0_6 = arith.constant 0 : index
    %c0_7 = arith.constant 0 : index
    %10 = vector.load %arg5[%c0_6, %c0_7] : memref<8x128xf32, #tpu.memory_space<vmem>>, vector<8x128xf32>
    %11 = vector.shape_cast %7 : vector<8x128xf32> to vector<1x8x128xf32>
    %cst = arith.constant dense<0.000000e+00> : vector<8x128xf32>
    %12 = vector.multi_reduction <add>, %11, %cst [0] : vector<1x8x128xf32> to vector<8x128xf32>
    %13 = arith.addf %10, %12 : vector<8x128xf32>
    %c0_8 = arith.constant 0 : index
    %c0_9 = arith.constant 0 : index
    %14 = vector.load %arg5[%c0_8, %c0_9] : memref<8x128xf32, #tpu.memory_space<vmem>>, vector<8x128xf32>
    tpu.vector_store %arg5[%c0_8, %c0_9], %13 {strides = array<i32>} : memref<8x128xf32, #tpu.memory_space<vmem>>, vector<8x128xf32>,
    %c0_10 = arith.constant 0 : index
    %c0_11 = arith.constant 0 : index
    %15 = vector.load %arg6[%c0_10, %c0_11] : memref<8x128xf32, #tpu.memory_space<vmem>>, vector<8x128xf32>
    %16 = vector.shape_cast %8 : vector<8x128xf32> to vector<1x8x128xf32>
    %cst_12 = arith.constant dense<0.000000e+00> : vector<8x128xf32>
    %17 = vector.multi_reduction <add>, %16, %cst_12 [0] : vector<1x8x128xf32> to vector<8x128xf32>
    %18 = arith.addf %15, %17 : vector<8x128xf32>
    %c0_13 = arith.constant 0 : index
    %c0_14 = arith.constant 0 : index
    %19 = vector.load %arg6[%c0_13, %c0_14] : memref<8x128xf32, #tpu.memory_space<vmem>>, vector<8x128xf32>
    tpu.vector_store %arg6[%c0_13, %c0_14], %18 {strides = array<i32>} : memref<8x128xf32, #tpu.memory_space<vmem>>, vector<8x128xf32>,
    %c0_15 = arith.constant 0 : index
    %c0_16 = arith.constant 0 : index
    %20 = vector.load %arg7[%c0_15, %c0_16] : memref<8x128xf32, #tpu.memory_space<vmem>>, vector<8x128xf32>
    %21 = vector.shape_cast %9 : vector<8x128xf32> to vector<1x8x128xf32>
    %cst_17 = arith.constant dense<0.000000e+00> : vector<8x128xf32>
    %22 = vector.multi_reduction <add>, %21, %cst_17 [0] : vector<1x8x128xf32> to vector<8x128xf32>
    %23 = arith.addf %20, %22 : vector<8x128xf32>
    %c0_18 = arith.constant 0 : index
    %c0_19 = arith.constant 0 : index
    %24 = vector.load %arg7[%c0_18, %c0_19] : memref<8x128xf32, #tpu.memory_space<vmem>>, vector<8x128xf32>
    tpu.vector_store %arg7[%c0_18, %c0_19], %23 {strides = array<i32>} : memref<8x128xf32, #tpu.memory_space<vmem>>, vector<8x128xf32>,
    %c0_i32_20 = arith.constant 0 : i32
    %25 = arith.cmpi eq, %arg1, %c0_i32_20 : i32
    %26 = arith.extui %25 : i1 to i32
    %c0_i32_21 = arith.constant 0 : i32
    %27 = arith.cmpi ne, %26, %c0_i32_21 : i32
    scf.if %27 {
      %c0_22 = arith.constant 0 : index
      %c0_23 = arith.constant 0 : index
      %28 = vector.load %arg5[%c0_22, %c0_23] : memref<8x128xf32, #tpu.memory_space<vmem>>, vector<8x128xf32>
      %29 = vector.shape_cast %28 : vector<8x128xf32> to vector<1x8x128xf32>
      %cst_24 = arith.constant dense<0.000000e+00> : vector<1xf32>
      %30 = vector.multi_reduction <add>, %29, %cst_24 [1, 2] : vector<1x8x128xf32> to vector<1xf32>
      %31 = vector.shape_cast %30 : vector<1xf32> to vector<1x1x1xf32>
      %32 = vector.extract %31[0, 0, 0] : f32 from vector<1x1x1xf32>
      %c0_25 = arith.constant 0 : index
      %c0_26 = arith.constant 0 : index
      %33 = vector.load %arg6[%c0_25, %c0_26] : memref<8x128xf32, #tpu.memory_space<vmem>>, vector<8x128xf32>
      %34 = vector.shape_cast %33 : vector<8x128xf32> to vector<1x8x128xf32>
      %cst_27 = arith.constant dense<0.000000e+00> : vector<1xf32>
      %35 = vector.multi_reduction <add>, %34, %cst_27 [1, 2] : vector<1x8x128xf32> to vector<1xf32>
      %36 = vector.shape_cast %35 : vector<1xf32> to vector<1x1x1xf32>
      %37 = vector.extract %36[0, 0, 0] : f32 from vector<1x1x1xf32>
      %c0_28 = arith.constant 0 : index
      %c0_29 = arith.constant 0 : index
      %38 = vector.load %arg7[%c0_28, %c0_29] : memref<8x128xf32, #tpu.memory_space<vmem>>, vector<8x128xf32>
      %39 = vector.shape_cast %38 : vector<8x128xf32> to vector<1x8x128xf32>
      %cst_30 = arith.constant dense<0.000000e+00> : vector<1xf32>
      %40 = vector.multi_reduction <add>, %39, %cst_30 [1, 2] : vector<1x8x128xf32> to vector<1xf32>
      %41 = vector.shape_cast %40 : vector<1xf32> to vector<1x1x1xf32>
      %42 = vector.extract %41[0, 0, 0] : f32 from vector<1x1x1xf32>
      %43 = arith.addf %37, %42 : f32
      %cst_31 = arith.constant 2.500000e-01 : f32
      %44 = arith.mulf %32, %cst_31 : f32
      %cst_32 = arith.constant 2.500000e-01 : f32
      %45 = arith.mulf %43, %cst_32 : f32
      %cst_33 = arith.constant 2.000000e+00 : f32
      %46 = arith.mulf %cst_33, %44 : f32
      %cst_34 = arith.constant 9.99999974E-6 : f32
      %47 = arith.addf %46, %cst_34 : f32
      %cst_35 = arith.constant 9.99999974E-6 : f32
      %48 = arith.addf %45, %cst_35 : f32
      %49 = arith.divf %47, %48 : f32
      %cst_36 = arith.constant 1.000000e+00 : f32
      %50 = arith.subf %cst_36, %49 : f32
      %51 = vector.broadcast %50 : f32 to vector<1x128xf32>
      %c0_37 = arith.constant 0 : index
      %c0_38 = arith.constant 0 : index
      %c0_39 = arith.constant 0 : index
      %52 = vector.load %arg4[%c0_37, %c0_38, %c0_39] : memref<1x1x128xf32, #tpu.memory_space<vmem>>, vector<1x1x128xf32>
      %53 = vector.shape_cast %52 : vector<1x1x128xf32> to vector<1x128xf32>
      %54 = vector.shape_cast %51 : vector<1x128xf32> to vector<1x1x128xf32>
      tpu.vector_store %arg4[%c0_37, %c0_38, %c0_39], %54 {strides = array<i32>} : memref<1x1x128xf32, #tpu.memory_space<vmem>>, vector<1x1x128xf32>,
    } else {
    }
    return
  }
  func.func @transform_0(%arg0: i32, %arg1: i32) -> (i32, i32, i32) {
    %c0_i32 = arith.constant 0 : i32
    %c0_i32_0 = arith.constant 0 : i32
    return %arg0, %arg1, %c0_i32 : i32, i32, i32
  }
  func.func @transform_1(%arg0: i32, %arg1: i32) -> (i32, i32, i32) {
    %c0_i32 = arith.constant 0 : i32
    %c0_i32_0 = arith.constant 0 : i32
    return %arg0, %arg1, %c0_i32 : i32, i32, i32
  }
  func.func @transform_2(%arg0: i32, %arg1: i32) -> (i32, i32, i32) {
    %c0_i32 = arith.constant 0 : i32
    %c0_i32_0 = arith.constant 0 : i32
    %c0_i32_1 = arith.constant 0 : i32
    return %arg0, %c0_i32, %c0_i32_0 : i32, i32, i32
  }
}

</mosaic_0001>

<bundles_post_ra>
// kernel: tpu_custom_call.1
= control target key start
LH: loop header
LB: loop body
LE: loop exit
PB: predicated region body
PF: predicated region fallthrough
CT: control target
= control target key end

     0   :  { %7 = vsyncpa [#allocation6], 0  ;;  %s873_s0 = inlined_call_operand.hbm [shape: f32[2,8,128], index: 0, kind: input, shape index: {}]   ;;  %s874_s1 = inlined_call_operand.hbm [shape: f32[2,8,128], index: 1, kind: input, shape index: {}]   ;;  %s875_s2 = inlined_call_operand.hbm [shape: f32[2,1,128], index: 2, kind: output, shape index: {}]  }
   0x1   :  { %9 = vsyncpa [#allocation6 + $0x1], 0 }
   0x2   :  { %10 = vsyncpa [#allocation9], 0 }
   0x3   :  { %12 = vsyncpa [#allocation9 + $0x1], 0 }
   0x4   :  { %13 = vsyncpa [#allocation7], 0 }
   0x5   :  { %15 = vsyncpa [#allocation7 + $0x1], 0  ;;  %s652_s9 = smov 0   ;;  %s654_s10 = smov 0  }
   0x6   :  { %s656_s11 = smov 0   ;;  %s658_s12 = smov 0  }
   0x7   :  { %s660_s13 = smov 0   ;;  %s662_s14 = smov 0  }
   0x8 LB: > { %s395_s15 = sadd.s32 4294967295, %s632_s14   ;;  %s396_s16 = sadd.s32 4294967294, %s632_s14   ;;  %s632_s14 = sphi %s662_s14, %s21_s14   ;;  %s628_s13 = sphi %s660_s13, %s895_s13   ;;  %s624_s12 = sphi %s658_s12, %s894_s12   ;;  %s620_s11 = sphi %s656_s11, %s893_s11   ;;  %s616_s10 = sphi %s654_s10, %s892_s10   ;;  %s612_s9 = sphi %s652_s9, %s891_s9  }
   0x9   : > { %s33_s17 = sadd.s32 1, %s628_s13  ;;  %s42_s18 = sadd.s32 1, %s620_s11 }
   0xa   : > { %p35_p0 = scmp.ge.s32.totalorder %s33_s17, 2  ;;  %p49_p1 = scmp.ne.s32.totalorder %s620_s11, %s616_s10 }
   0xb   : > { %p50_p2 = scmp.eq.s32.totalorder %s632_s14, 0  ;;  %p55_p3 = scmp.ne.s32.totalorder %s616_s10, %s612_s9 }
   0xc   : > { %s897_s17 = smov (%p35_p0, %s33_s17), 0  ;;  %p56_p5 = scmp.eq.s32.totalorder %s395_s15, 0 }
   0xd   : > { %p693_p4 = por %p50_p2, %p49_p1  ;;  %s37_s20 = ssub.s32 %s628_s13, %s897_s17 }
   0xe   : > { %p107_p6 = scmp.eq.s32.totalorder %s395_s15, 1  ;;  %p40_p7 = scmp.eq.s32.totalorder %s37_s20, 0 }
   0xf   : > { %p699_p8 = por %p56_p5, %p55_p3  ;;  %p113_p10 = scmp.eq.s32.totalorder %s396_s16, 1 }
  0x10   : > { %p703_p9 = por %p107_p6, %p49_p1  ;;  %p434_p13 = scmp.lt.s32.totalorder %s632_s14, 2 }
  0x11   : > { %s879_s21 = scalar_select %p699_p8, 1, 0 }
  0x12   : > { %s880_s22 = scalar_select %p703_p9, 1, 0 }
  0x13   : > { %s708_s23 = scalar_select %p40_p7, %s620_s11, %s42_s18  }
  0x14   : > { %p710_p11 = por %p113_p10, %p55_p3  ;;  %s717_s25 = sand.u32 1, %s620_s11  }
  0x15   : > { %s399_s26 = sshll.u32 %s717_s25, 3  ;;  %s400_s27 = sshll.u32 %s628_s13, 7 }
  0x16   : > { %s881_s24 = scalar_select %p710_p11, 1, 0 }
  0x17   : > { %s726_s30 = scalar_lea.hbm %s873_s0, %s400_s27  ;;  %s137_s3 = scalar_lea.vmem [#allocation5], %s399_s26 }
  0x18   : > { %s145_s4 = sshll.u32 %s137_s3, 4  ;;  %p734_p0 = pnand %p434_p13, %p693_p4  ;;  %s730_s4 = int_to_ptr.vmem [resolvable:$true] %s145_s4 }
  0x19   : > { %s134_s6 = scalar_lea.sflag [#allocation6], %s717_s25  ;;  %s486_s7 = scalar_lea.hbm %s726_s30, 128 }
  0x1a   : > { %p487_p3 = scmp.ne.s32.totalorder %s726_s30, %s486_s7  ;;  %p488_p5 = pneg %p734_p0 }
  0x1b   : > { %s491_s16 = scalar_lea.hbm %s873_s0, 256  ;;  %p492_p4 = scmp.lt.u32.totalorder %s726_s30, %s873_s0 }
  0x1c   : > { %p489_p6 = pnand %p488_p5, %p487_p3  ;;  %p493_p10 = scmp.lt.u32.totalorder %s491_s16, %s486_s7 }
  0x1d   : > { %p495_p12 = scmp.lt.u32.totalorder %s486_s7, %s726_s30 }
  0x1e   : > { %p490_p7 = pneg %p489_p6  ;;  %p494_p13 = por %p493_p10, %p492_p4 }
  0x20   : > { %p496_p1 = por %p495_p12, %p494_p13 }
  0x22   : > { %p497_p2 = pnand %p496_p1, %p490_p7 }
  0x24   : > { %500 = shalt.err (!%p497_p2)
}
  0x25   : > { %s501_s20 = scalar_lea.vmem %s730_s4, 128  ;;  %s634_s28 = smov [#allocation5]  }
  0x26   : > { %p502_p3 = scmp.ne.s32.totalorder %s730_s4, %s501_s20  ;;  %s506_s29 = sshll.u32 %s634_s28, 4  ;;  %s507_s29 = int_to_ptr.vmem [resolvable:$false] %s506_s29 }
  0x27   : > { %s508_s3 = scalar_lea.vmem %s507_s29, 256  ;;  %p509_p9 = scmp.lt.s32.totalorder %s730_s4, %s507_s29 }
  0x28   : > { %p504_p6 = pnand %p502_p3, %p488_p5  ;;  %p510_p4 = scmp.lt.s32.totalorder %s508_s3, %s501_s20 }
  0x2a   : > { %p505_p11 = pneg %p504_p6  ;;  %p511_p10 = por %p510_p4, %p509_p9 }
  0x2c   : > { %p512_p12 = pnand %p511_p10, %p505_p11 }
  0x2e   : > { %515 = shalt.err (!%p512_p12)
}
  0x2f   : > { %426 = dma.hbm_to_vmem [thread:$0]  (!%p734_p0), %s726_s30, 128, %s730_s4, %s134_s6  }
  0x30   : > { %p883_p1 = scmp.lt.s32.totalorder %s632_s14, 3  ;;  %p884_p2 = scmp.ge.s32.totalorder %s632_s14, 1 }
  0x31   : > { %s779_s16 = scalar_lea.hbm %s874_s1, %s400_s27  ;;  %s156_s18 = scalar_lea.vmem [#allocation8], %s399_s26 }
  0x32   : > { %p770_p7 = pnand %p884_p2, %p883_p1  ;;  %s164_s19 = sshll.u32 %s156_s18, 4  ;;  %s165_s19 = int_to_ptr.vmem [resolvable:$true] %s164_s19 }
  0x33   : > { %s153_s30 = scalar_lea.sflag [#allocation9], %s717_s25  ;;  %s516_s4 = scalar_lea.hbm %s779_s16, 128 }
  0x34   : > { %s885_s7 = scalar_select %p770_p7, 1, 0 }
  0x35   : > { %p517_p9 = scmp.ne.s32.totalorder %s779_s16, %s516_s4  ;;  %s521_s27 = scalar_lea.hbm %s874_s1, 256 }
  0x36   : > { %p522_p3 = scmp.lt.u32.totalorder %s779_s16, %s874_s1  ;;  %p523_p6 = scmp.lt.u32.totalorder %s521_s27, %s516_s4 }
  0x37   : > { %p519_p11 = pnand %p517_p9, %p488_p5  ;;  %p525_p10 = scmp.lt.u32.totalorder %s516_s4, %s779_s16 }
  0x38   : > { %p524_p4 = por %p523_p6, %p522_p3 }
  0x39   : > { %p520_p13 = pneg %p519_p11 }
  0x3a   : > { %p526_p12 = por %p525_p10, %p524_p4 }
  0x3c   : > { %p527_p1 = pnand %p526_p12, %p520_p13 }
  0x3e   : > { %530 = shalt.err (!%p527_p1)
}
  0x3f   : > { %s531_s25 = scalar_lea.vmem %s165_s19, 128  ;;  %s635_s26 = smov [#allocation8]  }
  0x40   : > { %p532_p2 = scmp.ne.s32.totalorder %s165_s19, %s531_s25  ;;  %s536_s3 = sshll.u32 %s635_s26, 4  ;;  %s537_s3 = int_to_ptr.vmem [resolvable:$false] %s536_s3 }
  0x41   : > { %s538_s8 = scalar_lea.vmem %s537_s3, 256  ;;  %p539_p8 = scmp.lt.s32.totalorder %s165_s19, %s537_s3 }
  0x42   : > { %p534_p9 = pnand %p532_p2, %p488_p5  ;;  %p540_p7 = scmp.lt.s32.totalorder %s538_s8, %s531_s25 }
  0x44   : > { %p535_p11 = pneg %p534_p9  ;;  %p541_p3 = por %p540_p7, %p539_p8 }
  0x46   : > { %p542_p6 = pnand %p541_p3, %p535_p11 }
  0x48   : > { %545 = shalt.err (!%p542_p6)
}
  0x49   : > { %429 = dma.hbm_to_vmem [thread:$0]  (!%p734_p0), %s779_s16, 128, %s165_s19, %s153_s30  }
  0x4a   : > { %p886_p13 = scmp.ne.s32.totalorder %s885_s7, 0 }
  0x4b   : > { %s806_s15 = sand.u32 (!%p886_p13), 1, %s616_s10   ;;  %p887_p5 = scmp.ne.s32.totalorder (!%p886_p13), %s879_s21, 0 }
  0x4c   : > { %173 = sbr.rel (%p886_p13) target bundleno = 385 (0x181), region = 28  ;;  %s404_s18 = sshll.u32 (!%p886_p13), %s806_s15, 3 }
  0x4d   : > { %s176_s4 = scalar_lea.sflag (!%p886_p13), [#allocation6], %s806_s15  ;;  %s179_s6 = scalar_lea.vmem (!%p886_p13), [#allocation5], %s404_s18 }
  0x53   : > { %599 = dma.done.wait (%p887_p5), %s176_s4, 128  }
  0x54   : > { %601 = vsyncadd (%p887_p5), %s176_s4, 4294967168  ;;  %s185_s5 = scalar_lea.sflag [#allocation9], %s806_s15  ;;  %s188_s16 = scalar_lea.vmem [#allocation8], %s404_s18 }
  0x55   : > { %603 = dma.done.wait (%p887_p5), %s185_s5, 128  }
  0x56   : > { %605 = vsyncadd (%p887_p5), %s185_s5, 4294967168  ;;  %v221_v0 = vld [vmem:[%s188_s16] sm:$0xff]  ;;  %v220_v1 = vld [vmem:[%s179_s6] sm:$0xff]  ;;  %s406_s3 = sshll.u32 %s624_s12, 4  ;;  %s212_s18 = scalar_lea.vmem [#allocation10], %s806_s15 }
  0x57   : > { %v224_v2 = vmul.f32 %v221_v0, %v221_v0  ;;  %v222_v3 = vmul.f32 %v221_v0, %v220_v1  ;;  %v223_v4 = vmul.f32 %v220_v1, %v220_v1  ;;  %s296_s4 = sshll.u32 %s212_s18, 4  ;;  %p888_p0 = scmp.ne.s32.totalorder %s880_s22, 0  ;;  %s826_s4 = int_to_ptr.vmem [resolvable:$true] %s296_s4 }
  0x58   : > { %s636_s12 = smov [#allocation10]  }
  0x59   : > { %261 = vadd.xlane.f32.xlu1 %v224_v2  ;;  %241 = vadd.xlane.f32.xlu0 %v222_v3 }
  0x5d   : > { %251 = vadd.xlane.f32.xlu0 %v223_v4 }
  0xe6   : > { %v262_v5 = vpop.xlane.xlu1 %261  ;;  %v242_v6 = vpop.xlane.xlu0 %241 }
  0xe7   : > { %v263_v7 = vrot.slane %v262_v5, 4  ;;  %v243_v8 = vrot.slane %v242_v6, 4 }
  0xe9   : > { %v264_v9 = vadd.f32 %v263_v7, %v262_v5  ;;  %v244_v10 = vadd.f32 %v243_v8, %v242_v6 }
  0xea   : > { %v252_v11 = vpop.xlane.xlu0 %251 }
  0xeb   : > { %v265_v12 = vrot.slane %v264_v9, 2  ;;  %v245_v13 = vrot.slane %v244_v10, 2  ;;  %v253_v14 = vrot.slane %v252_v11, 4 }
  0xed   : > { %v254_v15 = vadd.f32 %v253_v14, %v252_v11  ;;  %v246_v16 = vadd.f32 %v245_v13, %v244_v10  ;;  %v266_v17 = vadd.f32 %v265_v12, %v264_v9 }
  0xef   : > { %v255_v18 = vrot.slane %v254_v15, 2  ;;  %v247_v19 = vrot.slane %v246_v16, 1  ;;  %v267_v22 = vrot.slane %v266_v17, 1 }
  0xf1   : > { %v256_v20 = vadd.f32 %v255_v18, %v254_v15  ;;  %v248_v21 = vadd.f32 %v247_v19, %v246_v16  ;;  %v268_v25 = vadd.f32 %v267_v22, %v266_v17 }
  0xf3   : > { %409 = vpush %v248_v21  ;;  %v257_v23 = vrot.slane %v256_v20, 1 }
  0xf5   : > { %v258_v24 = vadd.f32 %v257_v23, %v256_v20 }
  0xf7   : > { %411 = vpush %v258_v24 }
  0xf8   : > { %413 = vpush %v268_v25 }
 0x124   : > { %s410_s21 = spop %409 }
 0x125   : > { %s271_s28 = smul.f32 0.25, %s410_s21  ;;  %s284_s21 = scalar_lea.sflag [#allocation7], %s806_s15 }
 0x127   : > { %s273_s29 = smul.f32 2.0, %s271_s28 }
 0x128   : > { %s412_s7 = spop %411 }
 0x129   : > { %s414_s19 = spop %413  ;;  %s274_s25 = sadd.f32 1e-05, %s273_s29 }
 0x12a   : > { %s270_s30 = sadd.f32 %s414_s19, %s412_s7  ;;  %s824_s7 = scalar_lea.hbm %s875_s2, %s406_s3 }
 0x12b   : > { %s546_s19 = scalar_lea.vmem %s826_s4, 16 }
 0x12c   : > { %s272_s20 = smul.f32 0.25, %s270_s30  ;;  %p547_p8 = scmp.ne.s32.totalorder %s826_s4, %s546_s19 }
 0x12d   : > { %s550_s30 = sshll.u32 %s636_s12, 4  ;;  %s551_s30 = int_to_ptr.vmem [resolvable:$false] %s550_s30 }
 0x12e   : > { %s275_s27 = sadd.f32 1e-05, %s272_s20  ;;  %p548_p7 = pnand %p547_p8, %p888_p0 }
 0x12f   : > { %s552_s20 = scalar_lea.vmem %s551_s30, 32  ;;  %p553_p10 = scmp.lt.s32.totalorder %s826_s4, %s551_s30 }
 0x130   : > { %v276_v26 = vstv %s275_s27  ;;  %p549_p4 = pneg %p548_p7  ;;  %p554_p12 = scmp.lt.s32.totalorder %s552_s20, %s546_s19 }
 0x131   : > { %484 = vrcp.f32 %v276_v26 }
 0x132   : > { %p555_p1 = por %p554_p12, %p553_p10 }
 0x134   : > { %p556_p2 = pnand %p555_p1, %p549_p4 }
 0x13b   : > { %v485_v27 = vpop.eup %484 }
 0x13c   : > { %415 = vpush %v485_v27 }
 0x16d   : > { %s416_s26 = spop %415 }
 0x16e   : > { %s279_s8 = smul.f32 %s416_s26, %s274_s25 }
 0x170   : > { %s280_s6 = ssub.f32 1.0, %s279_s8 }
 0x172   : > { %v281_v28 = vstv %s280_s6 }
 0x173   : > { %282 = vst [vmem:[%s212_s18] sm:$0x1] %v281_v28 }
 0x174   : > { %559 = shalt.err (!%p556_p2)
}
 0x175   : > { %s560_s15 = scalar_lea.hbm %s824_s7, 16  ;;  %s564_s29 = scalar_lea.hbm %s875_s2, 32 }
 0x176   : > { %p561_p9 = scmp.ne.s32.totalorder %s824_s7, %s560_s15  ;;  %p565_p6 = scmp.lt.u32.totalorder %s824_s7, %s875_s2 }
 0x177   : > { %p566_p13 = scmp.lt.u32.totalorder %s564_s29, %s560_s15  ;;  %p568_p8 = scmp.lt.u32.totalorder %s560_s15, %s824_s7 }
 0x178   : > { %p562_p11 = pnand %p561_p9, %p888_p0 }
 0x179   : > { %p567_p5 = por %p566_p13, %p565_p6 }
 0x17a   : > { %p563_p3 = pneg %p562_p11 }
 0x17b   : > { %p569_p7 = por %p568_p8, %p567_p5 }
 0x17d   : > { %p570_p4 = pnand %p569_p7, %p563_p3 }
 0x17f   : > { %573 = shalt.err (!%p570_p4)
}
 0x180   : > { %421 = dma.vmem_to_hbm [thread:$0]  (%p888_p0), %s826_s4, 16, %s824_s7, %s284_s21  }
 0x181 PF: > { %s308_s3 = sand.u32 1, %s612_s9   ;;  %p889_p10 = scmp.ne.s32.totalorder %s881_s24, 0 }
 0x182   : > { %p890_p12 = scmp.ge.s32.totalorder %s632_s14, 2  ;;  %s309_s8 = scalar_lea.sflag [#allocation7], %s308_s3 }
 0x184   : > { %p431_p1 = pnand %p890_p12, %p889_p10 }
 0x186   : > { %607 = dma.done.wait (!%p431_p1), %s309_s8, 16  }
 0x187   : > { %609 = vsyncadd (!%p431_p1), %s309_s8, 4294967280  ;;  %s21_s14 = sadd.s32 1, %s632_s14   ;;  %s891_s9 = smov %s616_s10 }
 0x188   : > { %p18_p2 = scmp.ge.s32.totalorder %s21_s14, 4   ;;  %s892_s10 = smov %s620_s11 }
 0x189   : > { %s893_s11 = smov %s708_s23  ;;  %s894_s12 = smov %s628_s13 }
 0x18a   : > { %s895_s13 = smov %s897_s17  ;;  %20 = sbr.rel (!%p18_p2) target bundleno = 8 (0x8), region = 94 }
 0x191   :  { %313 = vsyncpa [#allocation6], 1 }
 0x192   :  { %315 = vsyncpa [#allocation6 + $0x1], 1 }
 0x193   :  { %316 = vsyncpa [#allocation9], 1 }
 0x194   :  { %318 = vsyncpa [#allocation9 + $0x1], 1 }
 0x195   :  { %319 = vsyncpa [#allocation7], 1 }
 0x196   :  { %321 = vsyncpa [#allocation7 + $0x1], 1 }

</bundles_post_ra>
